<compile_context>
chip_gen: v5e
topology: v5e:2x2
jax: 0.10.0
libtpu: 0.0.40
codegen_flags: <defaults>
</compile_context>

<pallas_src>
import jax
import jax.numpy as jnp
from jax.experimental import pallas as pl
from jax.experimental.pallas import tpu as pltpu


def _round_up(x: int, m: int) -> int:
    return ((x + m - 1) // m) * m


def _cdiv(a: int, b: int) -> int:
    return (a + b - 1) // b


def _vmem_capacity_bytes() -> int:
    """Physical VMEM of the current chip; conservative 64 MiB fallback."""
    try:
        cap = getattr(pltpu.get_tpu_info(), "vmem_capacity_bytes", None)
        if cap:
            return int(cap)
    except Exception:
        pass
    return 64 << 20


# ----------------------------------------------------------------------------
# Kernels
# ----------------------------------------------------------------------------
def _linear_kernel(x_ref, w_ref, b_ref, o_ref):
    """One (row-tile, column-panel) output block, full K in one shot."""
    acc = jnp.dot(x_ref[...], w_ref[...], preferred_element_type=jnp.float32)
    o_ref[...] = (acc + b_ref[...].astype(jnp.float32)).astype(o_ref.dtype)


def _linear_kernel_ktiled(x_ref, w_ref, b_ref, o_ref, acc_ref):
    """K-tiled variant (huge D_in): f32 accumulator, init/finalize via pl.when."""
    k = pl.program_id(2)

    @pl.when(k == 0)
    def _():
        acc_ref[...] = jnp.zeros_like(acc_ref)

    acc_ref[...] += jnp.dot(x_ref[...], w_ref[...],
                            preferred_element_type=jnp.float32)

    @pl.when(k == pl.num_programs(2) - 1)
    def _():
        o_ref[...] = (acc_ref[...] + b_ref[...].astype(jnp.float32)
                      ).astype(o_ref.dtype)


# ----------------------------------------------------------------------------
# Wrapper: TimeDistributed(nn.Linear) forward
# ----------------------------------------------------------------------------
def time_distributed_linear(input_seq, weight, bias, *, tile_m=None, tile_n=512):
    """TimeDistributed(nn.Linear) forward.

    input_seq : (B, T, D_IN)
    weight    : (D_IN, D_OUT)
    bias      : (D_OUT,)
    returns   : (B, T, D_OUT)
    """
    assert input_seq.ndim > 2
    B, T = input_seq.shape[0], input_seq.shape[1]
    D_in = input_seq.shape[-1]
    D_out = weight.shape[1]
    dtype = input_seq.dtype
    itemsize = jnp.dtype(dtype).itemsize

    # --- TimeDistributed fold: (B, T, ...) -> (B*T, D_in) --------------------
    x2d = input_seq.reshape(B * T, D_in)
    b2d = bias.reshape(1, D_out)
    M = B * T

    # --- chip-aware budgets & defaults ---------------------------------------
    vmem_phys = _vmem_capacity_bytes()
    budget = min(int(vmem_phys * 3 // 4), 96 << 20)       # usable working set
    if tile_m is None:
        tile_m = 1024 if vmem_phys >= (100 << 20) else 512  # v5e/v6e vs v7x

    def _vmem_limit(est):
        return int(min(max(est + (4 << 20), 32 << 20), vmem_phys - (8 << 20)))

    # dtype-native sublane packing: 8 (f32), 16 (bf16), 32 (int8/fp8)
    sublane = max(8, 32 // itemsize)

    # Row tile: big by default; cap so small/medium M still yields >=2 blocks
    # (both v7x TensorCores get work; harmless on single-TC v5e/v6e).
    tm = max(sublane, min(tile_m, _round_up(_cdiv(M, 2), sublane)))

    def full_k_bytes(tm_, tn_):
        # double-buffered x tile, weight panel, output tile, bias row
        return 2 * itemsize * (tm_ * D_in + D_in * tn_ + tm_ * tn_
                               + 8 * _round_up(tn_, 128))

    # Column-panel width (lane-dense); clamp to the full D_out when it would
    # exceed it (full-extent last dim is always a legal block).
    tn_panel = min(_round_up(tile_n, 128), _round_up(D_out, 128))
    if tn_panel >= D_out:
        tn_panel = D_out

    # --- path (a): weight + bias fully resident (fetched once) ---------------
    tm_res = tm
    while full_k_bytes(tm_res, D_out) > budget and tm_res > 256:
        tm_res = max(256, tm_res // 2)

    # --- path (b): column panels, rows innermost (panel resident over rows) --
    tm_p = tm
    while full_k_bytes(tm_p, tn_panel) > budget and tm_p > 256:
        tm_p = max(256, tm_p // 2)

    if full_k_bytes(tm_res, D_out) <= budget:
        # Weight block index is (0, 0) for the whole grid -> DMA'd once.
        grid = (_cdiv(M, tm_res),)
        out2d = pl.pallas_call(
            _linear_kernel,
            out_shape=jax.ShapeDtypeStruct((M, D_out), dtype),
            grid_spec=pltpu.PrefetchScalarGridSpec(
                num_scalar_prefetch=0,
                grid=grid,
                in_specs=[
                    pl.BlockSpec((tm_res, D_in), lambda i: (i, 0)),
                    pl.BlockSpec((D_in, D_out), lambda i: (0, 0)),   # resident
                    pl.BlockSpec((1, D_out), lambda i: (0, 0)),      # resident
                ],
                out_specs=pl.BlockSpec((tm_res, D_out), lambda i: (i, 0)),
            ),
            compiler_params=pltpu.CompilerParams(
                dimension_semantics=("parallel",),
                vmem_limit_bytes=_vmem_limit(full_k_bytes(tm_res, D_out)),
            ),
        )(x2d, weight, b2d)

    elif full_k_bytes(tm_p, tn_panel) <= budget:
        # Rows innermost: each weight/bias column panel stays resident across
        # the whole row sweep (fetched once per panel, not once per row tile).
        grid = (_cdiv(D_out, tn_panel), _cdiv(M, tm_p))
        out2d = pl.pallas_call(
            _linear_kernel,
            out_shape=jax.ShapeDtypeStruct((M, D_out), dtype),
            grid_spec=pltpu.PrefetchScalarGridSpec(
                num_scalar_prefetch=0,
                grid=grid,
                in_specs=[
                    pl.BlockSpec((tm_p, D_in), lambda j, i: (i, 0)),
                    pl.BlockSpec((D_in, tn_panel), lambda j, i: (0, j)),
                    pl.BlockSpec((1, tn_panel), lambda j, i: (0, j)),
                ],
                out_specs=pl.BlockSpec((tm_p, tn_panel), lambda j, i: (i, j)),
            ),
            compiler_params=pltpu.CompilerParams(
                dimension_semantics=("parallel", "parallel"),
                vmem_limit_bytes=_vmem_limit(full_k_bytes(tm_p, tn_panel)),
            ),
        )(x2d, weight, b2d)

    else:
        # --- path (c): K-tiled (huge D_in; mainly v7x's 64 MiB VMEM) ---------
        tk = 512
        tm_k = min(tm, 512)
        tn_k = tn_panel

        def ktiled_bytes(tm_, tn_, tk_):
            return (2 * itemsize * (tm_ * tk_ + tk_ * tn_ + tm_ * tn_
                                    + 8 * _round_up(tn_, 128))
                    + 4 * tm_ * tn_)                       # f32 accumulator

        while ktiled_bytes(tm_k, tn_k, tk) > budget and tk > 128:
            tk //= 2
        while ktiled_bytes(tm_k, tn_k, tk) > budget and tm_k > 256:
            tm_k = max(256, tm_k // 2)

        # Zero-pad K to a multiple of tk (rare path only; zeros are exact).
        K_pad = _round_up(D_in, tk)
        x_k = x2d if K_pad == D_in else jnp.pad(x2d, ((0, 0), (0, K_pad - D_in)))
        w_k = weight if K_pad == D_in else jnp.pad(weight,
                                                   ((0, K_pad - D_in), (0, 0)))

        grid = (_cdiv(D_out, tn_k), _cdiv(M, tm_k), K_pad // tk)
        out2d = pl.pallas_call(
            _linear_kernel_ktiled,
            out_shape=jax.ShapeDtypeStruct((M, D_out), dtype),
            grid_spec=pltpu.PrefetchScalarGridSpec(
                num_scalar_prefetch=0,
                grid=grid,
                in_specs=[
                    pl.BlockSpec((tm_k, tk), lambda j, i, k: (i, k)),
                    pl.BlockSpec((tk, tn_k), lambda j, i, k: (k, j)),
                    pl.BlockSpec((1, tn_k), lambda j, i, k: (0, j)),
                ],
                out_specs=pl.BlockSpec((tm_k, tn_k), lambda j, i, k: (i, j)),
                scratch_shapes=[pltpu.VMEM((tm_k, tn_k), jnp.float32)],
            ),
            compiler_params=pltpu.CompilerParams(
                dimension_semantics=("parallel", "parallel", "arbitrary"),
                vmem_limit_bytes=_vmem_limit(ktiled_bytes(tm_k, tn_k, tk)),
            ),
        )(x_k, w_k, b2d)

    # --- TimeDistributed unfold ----------------------------------------------
    return out2d.reshape(B, T, D_out)


if __name__ == "__main__":
    key = jax.random.PRNGKey(0)

    def run_case(B, T, D_in, D_out):
        kx, kw, kb = jax.random.split(jax.random.fold_in(key, D_in * 1000 + D_out), 3)
        x = jax.random.normal(kx, (B, T, D_in), dtype=jnp.float32)
        bound = 1.0 / (D_in ** 0.5)  # nn.Linear-style uniform init bound
        w = jax.random.uniform(kw, (D_in, D_out), jnp.float32, -bound, bound)
        b = jax.random.uniform(kb, (D_out,), jnp.float32, -bound, bound)

        out = time_distributed_linear(x, w, b)
        jax.block_until_ready(out)

        ref = (x.reshape(B * T, D_in) @ w + b).reshape(B, T, D_out)
        assert out.shape == (B, T, D_out)
        assert jnp.allclose(out, ref, atol=1e-5, rtol=1e-5)

    # Small shapes implied by the forward: (batch=2, time=8, hidden 32 -> 64).
    run_case(2, 8, 32, 64)
    # Ragged row tile + non-128 feature dims (exercises the masked edge block).
    run_case(3, 5, 24, 48)

    print("KERNEL_OK")
</pallas_src>

<mosaic_0001>
module attributes {stable_mosaic.version = 11 : i64} {
  func.func @_linear_kernel(%arg0: i32, %arg1: memref<8x32xf32, #tpu.memory_space<vmem>>, %arg2: memref<32x64xf32, #tpu.memory_space<vmem>>, %arg3: memref<1x64xf32, #tpu.memory_space<vmem>>, %arg4: memref<8x64xf32, #tpu.memory_space<vmem>>) attributes {dimension_semantics = [#tpu.dimension_semantics<parallel>], iteration_bounds = array<i64: 2>, scalar_prefetch = 0 : i64, scratch_operands = 0 : i64, tpu.core_type = #tpu.core_type<tc>, window_params = [{transform_indices = @transform_0, window_bounds = array<i64: 8, 32>}, {pipeline_mode = #tpu.pipeline_mode<synchronous>, transform_indices = @transform_1, window_bounds = array<i64: 32, 64>}, {pipeline_mode = #tpu.pipeline_mode<synchronous>, transform_indices = @transform_2, window_bounds = array<i64: 1, 64>}, {transform_indices = @transform_3, window_bounds = array<i64: 8, 64>}]} {
    %c0 = arith.constant 0 : index
    %c0_0 = arith.constant 0 : index
    %0 = vector.load %arg1[%c0, %c0_0] : memref<8x32xf32, #tpu.memory_space<vmem>>, vector<8x32xf32>
    %c0_1 = arith.constant 0 : index
    %c0_2 = arith.constant 0 : index
    %1 = vector.load %arg2[%c0_1, %c0_2] : memref<32x64xf32, #tpu.memory_space<vmem>>, vector<32x64xf32>
    %cst = arith.constant dense<0.000000e+00> : vector<8x64xf32>
    %2 = tpu.matmul %0, %1, %cst {dimension_numbers = #tpu.dot_dimension_numbers<[1], [0], [0], [1], [0, 0, 1, 1], [], []>} : vector<8x32xf32>, vector<32x64xf32>, vector<8x64xf32> -> vector<8x64xf32>
    %c0_3 = arith.constant 0 : index
    %c0_4 = arith.constant 0 : index
    %3 = vector.load %arg3[%c0_3, %c0_4] : memref<1x64xf32, #tpu.memory_space<vmem>>, vector<1x64xf32>
    %4 = vector.broadcast %3 : vector<1x64xf32> to vector<8x64xf32>
    %5 = arith.addf %2, %4 : vector<8x64xf32>
    %c0_5 = arith.constant 0 : index
    %c0_6 = arith.constant 0 : index
    %6 = vector.load %arg4[%c0_5, %c0_6] : memref<8x64xf32, #tpu.memory_space<vmem>>, vector<8x64xf32>
    tpu.vector_store %arg4[%c0_5, %c0_6], %5 {strides = array<i32>} : memref<8x64xf32, #tpu.memory_space<vmem>>, vector<8x64xf32>,
    return
  }
  func.func @transform_0(%arg0: i32) -> (i32, i32) {
    %c0_i32 = arith.constant 0 : i32
    %c0_i32_0 = arith.constant 0 : i32
    return %arg0, %c0_i32 : i32, i32
  }
  func.func @transform_1(%arg0: i32) -> (i32, i32) {
    %c0_i32 = arith.constant 0 : i32
    %c0_i32_0 = arith.constant 0 : i32
    %c0_i32_1 = arith.constant 0 : i32
    return %c0_i32, %c0_i32_0 : i32, i32
  }
  func.func @transform_2(%arg0: i32) -> (i32, i32) {
    %c0_i32 = arith.constant 0 : i32
    %c0_i32_0 = arith.constant 0 : i32
    %c0_i32_1 = arith.constant 0 : i32
    return %c0_i32, %c0_i32_0 : i32, i32
  }
  func.func @transform_3(%arg0: i32) -> (i32, i32) {
    %c0_i32 = arith.constant 0 : i32
    %c0_i32_0 = arith.constant 0 : i32
    return %arg0, %c0_i32 : i32, i32
  }
}

</mosaic_0001>

<bundles_post_ra>
// kernel: tpu_custom_call.1
= control target key start
LH: loop header
LB: loop body
LE: loop exit
PB: predicated region body
PF: predicated region fallthrough
CT: control target
= control target key end

     0   :  { %8 = vsyncpa [#allocation3], 0  ;;  %s705_s0 = inlined_call_operand.hbm [shape: f32[16,32], index: 0, kind: input, shape index: {}]   ;;  %s706_s1 = inlined_call_operand.hbm [shape: f32[32,64], index: 1, kind: input, shape index: {}]   ;;  %s707_s2 = inlined_call_operand.vmem [shape: f32[1,64], index: 2, kind: input, shape index: {}]   ;;  %s708_s3 = inlined_call_operand.hbm [shape: f32[16,64], index: 3, kind: output, shape index: {}]  }
   0x1   :  { %10 = vsyncpa [#allocation3 + $0x1], 0 }
   0x2   :  { %11 = vsyncpa [#allocation6], 0 }
   0x3   :  { %12 = vsyncpa [#allocation4], 0 }
   0x4   :  { %14 = vsyncpa [#allocation4 + $0x1], 0  ;;  %s566_s12 = smov 0   ;;  %s568_s13 = smov 0  }
   0x5   :  { %s570_s14 = smov 0   ;;  %s572_s15 = smov 0  }
   0x6 LB: > { %s130_s18 = sshll.u32 %s706_s1, 4  ;;  %s590_s19 = sadd.s32 4294967295, %s541_s15   ;;  %s541_s15 = sphi %s572_s15, %s718_s15   ;;  %s537_s14 = sphi %s570_s14, %s717_s14   ;;  %s533_s13 = sphi %s568_s13, %s716_s13   ;;  %s529_s12 = sphi %s566_s12, %s715_s12   ;;  %s131_s18 = int_to_ptr.hbm [resolvable:$true] %s130_s18 }
   0x7   : > { %p337_p0 = scmp.ge.s32.totalorder %s541_s15, 1  ;;  %p41_p1 = scmp.eq.s32.totalorder %s590_s19, 0 }
   0x8   : > { %p119_p2 = scmp.lt.s32.totalorder %s541_s15, 3  ;;  %s543_s21 = smov [#allocation5]  }
   0x9   : > { %s132_s22 = sshll.u32 %s543_s21, 4  ;;  %s544_s23 = smov 128   ;;  %s133_s22 = int_to_ptr.vmem [resolvable:$true] %s132_s22 }
   0xa   : > { %p595_p3 = pnand %p337_p0, %p119_p2  ;;  %s545_s24 = smov 8  }
   0xb   : > { %s336_s25 = sadd.s32 4294967294, %s541_s15   ;;  %s606_s26 = sadd.s32 1, %s541_s15  }
   0xc   : > { %p359_p4 = pneg %p595_p3  ;;  %s27_s27 = sadd.s32 1, %s537_s14 }
   0xd   : > { %s24_s28 = ssub.s32 %s541_s15, %s606_s26  ;;  %p34_p7 = scmp.ne.s32.totalorder %s537_s14, %s533_s13 }
   0xe   : > { %p360_p6 = pnand %p359_p4, %p41_p1  ;;  %p25_p8 = scmp.eq.s32.totalorder %s24_s28, 0 }
   0xf   : > { %p35_p9 = scmp.eq.s32.totalorder %s541_s15, 0  ;;  %p40_p10 = scmp.ne.s32.totalorder %s533_s13, %s529_s12 }
  0x10   : > { %362 = dma.hbm_to_vmem [thread:$0]  (!%p360_p6), %s131_s18, 512, %s133_s22, [#allocation6], %s544_s23, %s544_s23, %s545_s24  }
  0x11   : > { %p106_p11 = scmp.eq.s32.totalorder %s590_s19, 1  ;;  %p622_p12 = por %p41_p1, %p40_p10 }
  0x12   : > { %s618_s29 = scalar_select %p25_p8, %s537_s14, %s27_s27  }
  0x13   : > { %p626_p13 = por %p106_p11, %p34_p7  ;;  %p112_p0 = scmp.eq.s32.totalorder %s336_s25, 1 }
  0x14   : > { %p36_p2 = por %p35_p9, %p34_p7  ;;  %s149_s5 = sand.u32 1, %s537_s14  }
  0x15   : > { %p631_p4 = por %p112_p0, %p40_p10  ;;  %p372_p6 = scmp.lt.s32.totalorder %s541_s15, 2 }
  0x16   : > { %s340_s7 = sshll.u32 %s149_s5, 3  ;;  %s341_s8 = sshll.u32 %s541_s15, 3 }
  0x17   : > { %s157_s11 = scalar_lea.hbm %s705_s0, %s341_s8  ;;  %s153_s17 = scalar_lea.vmem [#allocation2], %s340_s7 }
  0x18   : > { %s159_s16 = sshll.u32 %s157_s11, 4  ;;  %s161_s18 = sshll.u32 %s153_s17, 4  ;;  %s160_s16 = int_to_ptr.hbm [resolvable:$true] %s159_s16  ;;  %s162_s18 = int_to_ptr.vmem [resolvable:$true] %s161_s18 }
  0x19   : > { %p640_p8 = pnand %p372_p6, %p36_p2  ;;  %s150_s22 = scalar_lea.sflag [#allocation3], %s149_s5 }
  0x1a   : > { %s441_s23 = sshra.s32 %s160_s16, 4  ;;  %s448_s28 = scalar_lea.hbm %s705_s0, 16  ;;  %s442_s23 = int_to_ptr.hbm [resolvable:$true] %s441_s23 }
  0x1b   : > { %s443_s24 = scalar_lea.hbm %s442_s23, 8  ;;  %p445_p9 = pneg %p640_p8 }
  0x1c   : > { %p444_p7 = scmp.ne.s32.totalorder %s442_s23, %s443_s24  ;;  %p449_p0 = scmp.lt.s32.totalorder %s442_s23, %s705_s0 }
  0x1d   : > { %p450_p2 = scmp.lt.s32.totalorder %s448_s28, %s443_s24 }
  0x1e   : > { %p446_p10 = pnand %p445_p9, %p444_p7 }
  0x1f   : > { %p451_p6 = por %p450_p2, %p449_p0 }
  0x20   : > { %p447_p11 = pneg %p446_p10 }
  0x22   : > { %p452_p5 = pnand %p451_p6, %p447_p11 }
  0x24   : > { %455 = shalt.err (!%p452_p5)
}
  0x25   : > { %366 = dma.hbm_to_vmem [thread:$0]  (!%p640_p8), %s160_s16, 128, %s162_s18, %s150_s22  }
  0x26   : > { %170 = sbr.rel (%p595_p3) target bundleno = 185 (0xb9), region = 32  ;;  %s657_s5 = sand.u32 (!%p595_p3), 1, %s533_s13  }
  0x27   : > { %s343_s9 = sshll.u32 (!%p595_p3), %s657_s5, 3  ;;  %s173_s10 = scalar_lea.sflag (!%p595_p3), [#allocation3], %s657_s5 }
  0x28   : > { %s176_s11 = scalar_lea.vmem (!%p595_p3), [#allocation2], %s343_s9 }
  0x2b   : > { %516 = dma.done.wait (%p622_p12), %s173_s10, 128  }
  0x2c   : > { %518 = vsyncadd (%p622_p12), %s173_s10, 4294967168 }
  0x2d   : > { %520 = dma.done.wait (%p41_p1), [#allocation6], 512  }
  0x2e   : > { %522 = vsyncadd (%p41_p1), [#allocation6], 4294966784  ;;  %v209_v0 = vld [vmem:[#allocation5 + $0x18] sm:$0xff]  ;;  %v208_v1 = vld [vmem:[#allocation5 + $0x10] sm:$0xff]  ;;  %vm214_vm0 = vcmask 261120   ;;  %s348_s20 = sshll.u32 %s590_s19, 3 }
  0x2f   : > { %230 = vmatpush.msra.mxu0 %v209_v0  ;;  %v207_v2 = vld [vmem:[#allocation5 + $0x8] sm:$0xff]  ;;  %v206_v3 = vld [vmem:[#allocation5] sm:$0xff]  ;;  %v205_v4 = vld [vmem:[%s176_s11] sm:$0xff]  ;;  %s251_s17 = scalar_lea.hbm %s708_s3, %s348_s20  ;;  %s204_s22 = scalar_lea.vmem [#allocation7], %s343_s9  ;;  %vm238_vm1 = vcmask 523264  }
  0x30   : > { %v410_v5 = vld [vmem:[%s707_s2] ss:$0 sm:$0xff]  ;;  %s253_s23 = sshll.u32 %s204_s22, 4  ;;  %s255_s24 = sshll.u32 %s251_s17, 4  ;;  %s254_s23 = int_to_ptr.vmem [resolvable:$true] %s253_s23  ;;  %s256_s24 = int_to_ptr.hbm [resolvable:$true] %s255_s24 }
  0x31   : > { %231 = vmatpush.msra.mxu0 %v208_v1  ;;  %s241_s25 = scalar_lea.sflag [#allocation4], %s657_s5  ;;  %s485_s19 = sshra.s32 %s256_s24, 4  ;;  %s486_s19 = int_to_ptr.hbm [resolvable:$true] %s485_s19 }
  0x32   : > { %s487_s27 = scalar_lea.hbm %s486_s19, 8  ;;  %s491_s8 = scalar_lea.hbm %s708_s3, 16 }
  0x33   : > { %232 = vmatpush.msra.mxu0 %v207_v2  ;;  %p488_p1 = scmp.ne.s32.totalorder %s486_s19, %s487_s27  ;;  %p492_p12 = scmp.lt.s32.totalorder %s486_s19, %s708_s3 }
  0x34   : > { %p493_p8 = scmp.lt.s32.totalorder %s491_s8, %s487_s27 }
  0x35   : > { %233 = vmatpush.msra.mxu0 %v206_v3  ;;  %p489_p3 = pnand %p488_p1, %p626_p13 }
  0x36   : > { %346 = vmatmul.msk.f32.vlgmr.msra.gmra.mxu0 %vm214_vm0, %v205_v4  ;;  %p494_p7 = por %p493_p8, %p492_p12 }
  0x37   : > { %p490_p5 = pneg %p489_p3 }
  0x39   : > { %p495_p9 = pnand %p494_p7, %p490_p5 }
  0xb3   : > { %v235_v6 = vpop.f32.mrf.mxu0 }
  0xb4   : > { %v236_v7 = vadd.f32 %v410_v5, %v235_v6 }
  0xb6   : > { %239 = vst.msk [vmem:[%s204_s22] sm:$0xff] %vm238_vm1, %v236_v7 }
  0xb7   : > { %498 = shalt.err (!%p495_p9)
}
  0xb8   : > { %357 = dma.vmem_to_hbm [thread:$0]  (%p626_p13), %s254_s23, 128, %s256_s24, %s241_s25  }
  0xb9 PF: > { %s267_s5 = sand.u32 1, %s529_s12   ;;  %p714_p10 = scmp.ge.s32.totalorder %s541_s15, 2 }
  0xba   : > { %s268_s11 = scalar_lea.sflag [#allocation4], %s267_s5 }
  0xbb   : > { %p368_p11 = pnand %p714_p10, %p631_p4 }
  0xbd   : > { %p369_p0 = pneg %p368_p11 }
  0xbf   : > { %524 = dma.done.wait (%p369_p0), %s268_s11, 128  }
  0xc0   : > { %526 = vsyncadd (%p369_p0), %s268_s11, 4294967168  ;;  %p17_p2 = scmp.ge.s32.totalorder %s606_s26, 4   ;;  %s715_s12 = smov %s533_s13 }
  0xc1   : > { %s716_s13 = smov %s537_s14  ;;  %s717_s14 = smov %s618_s29 }
  0xc2   : > { %s718_s15 = smov %s606_s26  ;;  %19 = sbr.rel (!%p17_p2) target bundleno = 6 (0x6), region = 81 }
  0xc7   :  { %274 = vsyncpa [#allocation3], 1 }
  0xc8   :  { %276 = vsyncpa [#allocation3 + $0x1], 1 }
  0xc9   :  { %277 = vsyncpa [#allocation6], 1 }
  0xca   :  { %278 = vsyncpa [#allocation4], 1 }
  0xcb   :  { %280 = vsyncpa [#allocation4 + $0x1], 1 }

</bundles_post_ra>
